<compile_context>
chip_gen: v5e
topology: v5e:2x2
jax: 0.10.0
libtpu: 0.0.40
codegen_flags: <defaults>
</compile_context>

<pallas_src>
import math

import jax
import jax.numpy as jnp
from jax.experimental import pallas as pl
from jax.experimental.pallas import tpu as pltpu


# ----------------------------------------------------------------------------
# helpers
# ----------------------------------------------------------------------------
def _round_up(a, m):
    return ((a + m - 1) // m) * m


def _vmem_capacity_bytes():
    try:
        info = pltpu.get_tpu_info()
        cap = getattr(info, "vmem_capacity_bytes", None)
        if cap:
            return int(cap)
    except Exception:
        pass
    return 64 << 20  # conservative: v7x per-core VMEM


def _small_path_max_nodes(vmem_cap):
    # bf16 adjacency (2*N^2 bytes) dominates; leave headroom for XW1 / temps.
    budget = int(vmem_cap * 0.72) - (6 << 20)
    if budget <= 0:
        return 1024
    n = int(math.sqrt(budget / 2.0))
    return max(1024, (n // 256) * 256)


def _build_norm_adj_padded(n, edge_index, n_rows, n_cols, dtype):
    """Fused GCN normalization (add_remaining_self_loops semantics):
    per-edge weights are scattered once directly into the padded buffer."""
    src = edge_index[0].astype(jnp.int32)
    dst = edge_index[1].astype(jnp.int32)
    ones = jnp.ones(src.shape, jnp.float32)

    in_deg = jnp.zeros((n,), jnp.float32).at[dst].add(ones)
    self_cnt = jnp.zeros((n,), jnp.float32).at[dst].add(
        jnp.where(src == dst, 1.0, 0.0))
    missing_self = jnp.where(self_cnt > 0.0, 0.0, 1.0)
    deg = in_deg + missing_self                       # row-sum of A + missing self loops
    dis = jnp.where(deg > 0.0, 1.0 / jnp.sqrt(deg), 0.0)

    idx = jnp.arange(n, dtype=jnp.int32)
    all_dst = jnp.concatenate([dst, idx])
    all_src = jnp.concatenate([src, idx])
    w = jnp.concatenate([dis[dst] * dis[src], missing_self * dis * dis])

    adj = jnp.zeros((n_rows, n_cols), dtype)
    return adj.at[all_dst, all_src].add(w.astype(dtype))


# ----------------------------------------------------------------------------
# Small-graph kernel: whole adjacency resident in VMEM, single invocation,
# adjacency read from HBM exactly once and reused for both aggregations.
# ----------------------------------------------------------------------------
def gcn_small_kernel(adj_ref, xw1_ref, b1_ref, w2c_ref, b2c_ref, out_ref):
    adj = adj_ref[...]                                                    # [N, N] bf16
    agg = jnp.dot(adj, xw1_ref[...], preferred_element_type=jnp.float32)  # [N, Hp]
    h1 = jnp.maximum(agg + b1_ref[...], 0.0)
    t = jnp.dot(h1.astype(jnp.bfloat16), w2c_ref[...],
                preferred_element_type=jnp.float32)                       # [N, 1]
    out_ref[...] = (jnp.dot(adj, t.astype(jnp.bfloat16),
                            preferred_element_type=jnp.float32)
                    + b2c_ref[...])                                       # [N, 1]


# ----------------------------------------------------------------------------
# Tiled kernels (large graphs).
# Stage 1:  t = ReLU(A @ (X@W1) + b1) @ W2pad          -> (n_rowpad, 128)
# Stage 2:  out = A @ t + b2[target]                   -> (n_rowpad, 128)
# ----------------------------------------------------------------------------
def gcn_stage1_kernel(adj_ref, xw1_ref, b1_ref, w2c_ref, t_ref, acc_ref):
    k = pl.program_id(1)

    @pl.when(k == 0)
    def _():
        acc_ref[...] = jnp.zeros_like(acc_ref)

    acc_ref[...] += jnp.dot(adj_ref[...], xw1_ref[...],
                            preferred_element_type=jnp.float32)

    @pl.when(k == pl.num_programs(1) - 1)
    def _():
        h1 = jnp.maximum(acc_ref[...] + b1_ref[...], 0.0)
        t_ref[...] = jnp.dot(h1.astype(jnp.bfloat16), w2c_ref[...],
                             preferred_element_type=jnp.float32
                             ).astype(t_ref.dtype)


def _make_stage2_kernel(tk2):
    def gcn_stage2_kernel(adj_ref, t_ref, b2_ref, out_ref, acc_ref):
        k = pl.program_id(1)

        @pl.when(k == 0)
        def _():
            acc_ref[...] = jnp.zeros_like(acc_ref)

        start = pl.multiple_of(k * tk2, tk2)
        t_blk = t_ref[pl.ds(start, tk2), :]               # resident t, in-kernel slice
        acc_ref[...] += jnp.dot(adj_ref[...], t_blk,
                                preferred_element_type=jnp.float32)

        @pl.when(k == pl.num_programs(1) - 1)
        def _():
            out_ref[...] = acc_ref[...] + b2_ref[...]

    return gcn_stage2_kernel


# ----------------------------------------------------------------------------
# Wrappers / glue
# ----------------------------------------------------------------------------
def _gcn_forward_small(x, edge_index, params, target_index):
    n = x.shape[0]
    w1, b1, w2, b2 = params
    h = w1.shape[1]
    h_pad = _round_up(h, 128)
    ti = int(target_index)

    adj = _build_norm_adj_padded(n, edge_index, n, n, jnp.bfloat16)
    xw1 = x.astype(jnp.float32) @ w1.astype(jnp.float32)
    xw1_p = jnp.zeros((n, h_pad), jnp.bfloat16).at[:, :h].set(
        xw1.astype(jnp.bfloat16))
    b1_p = jnp.zeros((1, h_pad), jnp.float32).at[:, :h].set(
        b1.reshape(1, h).astype(jnp.float32))
    w2c = jnp.zeros((h_pad, 1), jnp.bfloat16).at[:h, 0].set(
        w2[:, ti].astype(jnp.bfloat16))
    b2c = jnp.full((1, 1), b2.reshape(-1)[ti], jnp.float32)

    cap = _vmem_capacity_bytes()
    est = 2 * n * n + 2 * n * h_pad + 3 * 4 * n * h_pad + (4 << 20)
    vmem_limit = int(min(max(32 << 20, int(est * 1.3)), cap - (4 << 20)))

    vmem = pl.BlockSpec(memory_space=pltpu.MemorySpace.VMEM)
    out = pl.pallas_call(
        gcn_small_kernel,
        out_shape=jax.ShapeDtypeStruct((n, 1), jnp.float32),
        in_specs=[vmem] * 5,
        out_specs=vmem,
        compiler_params=pltpu.CompilerParams(vmem_limit_bytes=vmem_limit),
    )(adj, xw1_p, b1_p, w2c, b2c)
    return out[:, 0]


def _tiled_vmem_limit(tm, tk1, tk2, h_pad, n_kpad, cap):
    bf, f4 = 2, 4
    s1 = (2 * tm * tk1 * bf + 2 * tk1 * h_pad * bf + h_pad * 128 * bf
          + tm * h_pad * f4 + 2 * tm * 128 * bf + 4096)
    s2 = (2 * tm * tk2 * bf + 2 * n_kpad * 128 * bf
          + tm * 128 * f4 + 2 * tm * 128 * f4 + 4096)
    est = max(s1, s2)
    hi = min(cap - (2 << 20), 64 << 20)
    return int(min(max(int(est * 1.5) + (8 << 20), 32 << 20), hi))


def _gcn_forward_tiled(x, edge_index, params, target_index, *, tm=512, tk=512):
    n = x.shape[0]
    w1, b1, w2, b2 = params
    f, h = w1.shape
    h_pad = _round_up(h, 128)
    ti = int(target_index)

    # keep >= 2 row tiles so both v7x TensorCores get work on the parallel axis
    tm_eff = tm
    while tm_eff > 256 and _round_up(n, tm_eff) // tm_eff < 2:
        tm_eff //= 2
    tk1 = tk
    n_rowpad = _round_up(n, tm_eff)            # rows / cols padded independently
    n_kpad = _round_up(n, tk1)
    tk2 = tk1 * 2 if (n_kpad % (tk1 * 2) == 0) else tk1

    # fused scatter + normalize + bf16 cast + pad, single dense buffer
    adj = _build_norm_adj_padded(n, edge_index, n_rowpad, n_kpad, jnp.bfloat16)

    xw1 = x.astype(jnp.float32) @ w1.astype(jnp.float32)          # tiny, done in XLA
    xw1_p = jnp.zeros((n_kpad, h_pad), jnp.bfloat16).at[:n, :h].set(
        xw1.astype(jnp.bfloat16))
    b1_p = jnp.zeros((1, h_pad), jnp.float32).at[:, :h].set(
        b1.reshape(1, h).astype(jnp.float32))
    # target column folded into W2, lane-padded to 128 (only column 0 nonzero)
    w2c_p = jnp.zeros((h_pad, 128), jnp.bfloat16).at[:h, 0].set(
        w2[:, ti].astype(jnp.bfloat16))
    b2_row = jnp.full((1, 128), b2.reshape(-1)[ti], jnp.float32)

    cap = _vmem_capacity_bytes()
    cparams = pltpu.CompilerParams(
        dimension_semantics=("parallel", "arbitrary"),
        vmem_limit_bytes=_tiled_vmem_limit(tm_eff, tk1, tk2, h_pad, n_kpad, cap),
    )

    # Stage 1: t = ReLU(A @ (X@W1) + b1) @ W2pad   -> (n_rowpad, 128), lane-dense
    t_vec = pl.pallas_call(
        gcn_stage1_kernel,
        out_shape=jax.ShapeDtypeStruct((n_rowpad, 128), jnp.bfloat16),
        grid_spec=pltpu.PrefetchScalarGridSpec(
            num_scalar_prefetch=0,
            grid=(n_rowpad // tm_eff, n_kpad // tk1),
            in_specs=[
                pl.BlockSpec((tm_eff, tk1), lambda i, k: (i, k)),   # adj tile
                pl.BlockSpec((tk1, h_pad), lambda i, k: (k, 0)),    # XW1 rows
                pl.BlockSpec((1, h_pad), lambda i, k: (0, 0)),      # b1
                pl.BlockSpec((h_pad, 128), lambda i, k: (0, 0)),    # W2 column (padded)
            ],
            out_specs=pl.BlockSpec((tm_eff, 128), lambda i, k: (i, 0)),
            scratch_shapes=[pltpu.VMEM((tm_eff, h_pad), jnp.float32)],
        ),
        compiler_params=cparams,
    )(adj, xw1_p, b1_p, w2c_p)

    if n_rowpad < n_kpad:
        # padded adjacency columns are zero, so zero-padding t is safe
        t_vec = jnp.zeros((n_kpad, 128), t_vec.dtype).at[:n_rowpad].set(t_vec)

    # Stage 2: out = A @ t + b2[target]; whole t stays resident in VMEM
    out = pl.pallas_call(
        _make_stage2_kernel(tk2),
        out_shape=jax.ShapeDtypeStruct((n_rowpad, 128), jnp.float32),
        grid_spec=pltpu.PrefetchScalarGridSpec(
            num_scalar_prefetch=0,
            grid=(n_rowpad // tm_eff, n_kpad // tk2),
            in_specs=[
                pl.BlockSpec((tm_eff, tk2), lambda i, k: (i, k)),   # adj tile
                pl.BlockSpec((n_kpad, 128), lambda i, k: (0, 0)),   # full t, resident
                pl.BlockSpec((1, 128), lambda i, k: (0, 0)),        # b2 row
            ],
            out_specs=pl.BlockSpec((tm_eff, 128), lambda i, k: (i, 0)),
            scratch_shapes=[pltpu.VMEM((tm_eff, 128), jnp.float32)],
        ),
        compiler_params=cparams,
    )(adj, t_vec, b2_row)

    return out[:n, 0]


def model_wrapper_forward(x, edge_index, params, target_index, *,
                          tile=512, small_path_max_nodes=None):
    """Equivalent of ModelWrapper(model, target_index)(x, edge_index)."""
    n = x.shape[0]
    if small_path_max_nodes is None:
        small_path_max_nodes = _small_path_max_nodes(_vmem_capacity_bytes())
    if n <= small_path_max_nodes:
        return _gcn_forward_small(x, edge_index, params, target_index)
    return _gcn_forward_tiled(x, edge_index, params, target_index, tm=tile, tk=tile)


# ----------------------------------------------------------------------------
# Pure-JAX f32 reference
# ----------------------------------------------------------------------------
def _reference_norm_adj(n, edge_index):
    src, dst = edge_index[0], edge_index[1]
    adj = jnp.zeros((n, n), jnp.float32).at[dst, src].add(1.0)
    diag = jnp.diagonal(adj)
    adj = adj + jnp.diag(jnp.where(diag > 0, 0.0, 1.0))
    deg = adj.sum(axis=1)
    dis = jnp.where(deg > 0, 1.0 / jnp.sqrt(deg), 0.0)
    return adj * dis[:, None] * dis[None, :]


def reference_forward(x, edge_index, params, target_index):
    w1, b1, w2, b2 = params
    adj = _reference_norm_adj(x.shape[0], edge_index)
    h1 = jnp.maximum(adj @ x @ w1 + b1, 0.0)
    logits = adj @ h1 @ w2 + b2
    return logits[:, int(target_index)]


def init_params(key, in_feats, hidden, n_classes):
    k1, k2 = jax.random.split(key)
    w1 = jax.random.normal(k1, (in_feats, hidden), jnp.float32) / jnp.sqrt(in_feats)
    b1 = jnp.zeros((1, hidden), jnp.float32)
    w2 = jax.random.normal(k2, (hidden, n_classes), jnp.float32) / jnp.sqrt(hidden)
    b2 = jnp.zeros((1, n_classes), jnp.float32)
    return w1, b1, w2, b2


if __name__ == "__main__":
    IN_FEATS, HIDDEN, N_CLASSES, TARGET_INDEX = 8, 32, 4, 1

    key = jax.random.PRNGKey(0)
    kx1, kx2, kp, ks, kd = jax.random.split(key, 5)
    params = init_params(kp, IN_FEATS, HIDDEN, N_CLASSES)

    # ---- tiny graph: exercises the whole-VMEM resident kernel ----
    N1 = 16
    x1 = jax.random.normal(kx1, (N1, IN_FEATS), jnp.float32)
    idx = jnp.arange(N1, dtype=jnp.int32)
    nxt = (idx + 1) % N1
    edge_index1 = jnp.stack(
        [jnp.concatenate([idx, nxt]), jnp.concatenate([nxt, idx])], axis=0)

    out1 = model_wrapper_forward(x1, edge_index1, params, TARGET_INDEX)
    jax.block_until_ready(out1)
    ref1 = reference_forward(x1, edge_index1, params, TARGET_INDEX)
    assert out1.shape == (N1,)
    assert float(jnp.max(jnp.abs(out1 - ref1))) < 5e-2, "small-path mismatch"

    # ---- larger graph: force the tiled (grid) kernels ----
    # (the production cutoff is VMEM-derived, ~4.3k/6.6k nodes; override here
    #  so the tiled path is exercised at a small demo size)
    N2 = 1024
    x2 = jax.random.normal(kx2, (N2, IN_FEATS), jnp.float32)
    src2 = jax.random.randint(ks, (4 * N2,), 0, N2, dtype=jnp.int32)
    dst2 = jax.random.randint(kd, (4 * N2,), 0, N2, dtype=jnp.int32)
    edge_index2 = jnp.stack([src2, dst2], axis=0)

    out2 = model_wrapper_forward(x2, edge_index2, params, TARGET_INDEX,
                                 tile=512, small_path_max_nodes=0)
    jax.block_until_ready(out2)
    ref2 = reference_forward(x2, edge_index2, params, TARGET_INDEX)
    assert out2.shape == (N2,)
    assert float(jnp.max(jnp.abs(out2 - ref2))) < 5e-2, "tiled-path mismatch"

    print("KERNEL_OK")
</pallas_src>

<mosaic_0001>
module attributes {stable_mosaic.version = 11 : i64} {
  func.func @gcn_small_kernel(%arg0: memref<16x16xbf16, #tpu.memory_space<vmem>>, %arg1: memref<16x128xbf16, #tpu.memory_space<vmem>>, %arg2: memref<1x128xf32, #tpu.memory_space<vmem>>, %arg3: memref<128x1xbf16, #tpu.memory_space<vmem>>, %arg4: memref<1x1xf32, #tpu.memory_space<vmem>>, %arg5: memref<16x1xf32, #tpu.memory_space<vmem>>) attributes {dimension_semantics = [], scalar_prefetch = 0 : i64, scratch_operands = 0 : i64, tpu.core_type = #tpu.core_type<tc>} {
    %c0 = arith.constant 0 : index
    %c0_0 = arith.constant 0 : index
    %0 = vector.load %arg0[%c0, %c0_0] : memref<16x16xbf16, #tpu.memory_space<vmem>>, vector<16x16xbf16>
    %c0_1 = arith.constant 0 : index
    %c0_2 = arith.constant 0 : index
    %1 = vector.load %arg1[%c0_1, %c0_2] : memref<16x128xbf16, #tpu.memory_space<vmem>>, vector<16x128xbf16>
    %cst = arith.constant dense<0.000000e+00> : vector<16x128xf32>
    %2 = tpu.matmul %0, %1, %cst {dimension_numbers = #tpu.dot_dimension_numbers<[1], [0], [0], [1], [0, 0, 1, 1], [], []>} : vector<16x16xbf16>, vector<16x128xbf16>, vector<16x128xf32> -> vector<16x128xf32>
    %c0_3 = arith.constant 0 : index
    %c0_4 = arith.constant 0 : index
    %3 = vector.load %arg2[%c0_3, %c0_4] : memref<1x128xf32, #tpu.memory_space<vmem>>, vector<1x128xf32>
    %4 = vector.broadcast %3 : vector<1x128xf32> to vector<16x128xf32>
    %5 = arith.addf %2, %4 : vector<16x128xf32>
    %cst_5 = arith.constant 0.000000e+00 : f32
    %6 = vector.broadcast %cst_5 : f32 to vector<16x128xf32>
    %7 = arith.maximumf %5, %6 : vector<16x128xf32>
    %8 = arith.truncf %7 : vector<16x128xf32> to vector<16x128xbf16>
    %c0_6 = arith.constant 0 : index
    %c0_7 = arith.constant 0 : index
    %9 = vector.load %arg3[%c0_6, %c0_7] : memref<128x1xbf16, #tpu.memory_space<vmem>>, vector<128x1xbf16>
    %cst_8 = arith.constant dense<0.000000e+00> : vector<16x1xf32>
    %10 = tpu.matmul %8, %9, %cst_8 {dimension_numbers = #tpu.dot_dimension_numbers<[1], [0], [0], [1], [0, 0, 1, 1], [], []>} : vector<16x128xbf16>, vector<128x1xbf16>, vector<16x1xf32> -> vector<16x1xf32>
    %11 = arith.truncf %10 : vector<16x1xf32> to vector<16x1xbf16>
    %cst_9 = arith.constant dense<0.000000e+00> : vector<16x1xf32>
    %12 = tpu.matmul %0, %11, %cst_9 {dimension_numbers = #tpu.dot_dimension_numbers<[1], [0], [0], [1], [0, 0, 1, 1], [], []>} : vector<16x16xbf16>, vector<16x1xbf16>, vector<16x1xf32> -> vector<16x1xf32>
    %c0_10 = arith.constant 0 : index
    %c0_11 = arith.constant 0 : index
    %13 = vector.load %arg4[%c0_10, %c0_11] : memref<1x1xf32, #tpu.memory_space<vmem>>, vector<1x1xf32>
    %14 = vector.broadcast %13 : vector<1x1xf32> to vector<16x1xf32>
    %15 = arith.addf %12, %14 : vector<16x1xf32>
    %c0_12 = arith.constant 0 : index
    %c0_13 = arith.constant 0 : index
    %16 = vector.load %arg5[%c0_12, %c0_13] : memref<16x1xf32, #tpu.memory_space<vmem>>, vector<16x1xf32>
    tpu.vector_store %arg5[%c0_12, %c0_13], %15 {strides = array<i32>} : memref<16x1xf32, #tpu.memory_space<vmem>>, vector<16x1xf32>,
    return
  }
}

</mosaic_0001>

<bundles_post_ra>
// kernel: tpu_custom_call.1
= control target key start
LH: loop header
LB: loop body
LE: loop exit
PB: predicated region body
PF: predicated region fallthrough
CT: control target
= control target key end

     0   :  { %vm42_vm0 = vcmask 130048   ;;  %vm160_vm1 = vcmask 7168   ;;  %s295_s1 = inlined_call_operand.vmem [shape: bf16[16,128], index: 1, kind: input, shape index: {}]   ;;  %s296_s0 = inlined_call_operand.vmem [shape: bf16[16,16], index: 0, kind: input, shape index: {}]   ;;  %s297_s3 = inlined_call_operand.vmem [shape: bf16[128,1], index: 3, kind: input, shape index: {}]   ;;  %s298_s2 = inlined_call_operand.vmem [shape: f32[1,128], index: 2, kind: input, shape index: {}]   ;;  %s299_s4 = inlined_call_operand.<no memory space> [shape: f32[1,1], index: 4, kind: input, shape index: {}]   ;;  %s300_s5 = inlined_call_operand.vmem [shape: f32[16,1], index: 5, kind: output, shape index: {}]  }
   0x1   :  { %v210_v0 = vld [vmem:[%s295_s1] sm:$0xff]  ;;  %v218_v1 = vld [vmem:[%s297_s3 + $0x38] sm:$0xff]  ;;  %v217_v3 = vld [vmem:[%s297_s3 + $0x30] sm:$0xff]  ;;  %v10_v18 = vstv %s299_s4 }
   0x2   :  { %v209_v2 = vld [vmem:[%s296_s0] sm:$0xff]  ;;  %53 = vmatpush.bf16.msra.mxu0 %v210_v0  ;;  %127 = vmatpush.bf16.msra.mxu1 %v218_v1  ;;  %v216_v4 = vld [vmem:[%s297_s3 + $0x28] sm:$0xff]  ;;  %v214_v6 = vld [vmem:[%s297_s3 + $0x18] sm:$0xff]  ;;  %11 = vst [vmem:[#allocation2] sm:$0x1] %v10_v18 }
   0x3   :  { %v215_v5 = vld [vmem:[%s297_s3 + $0x20] sm:$0xff]  ;;  %v213_v7 = vld [vmem:[%s297_s3 + $0x10] sm:$0xff]  ;;  %v212_v8 = vld [vmem:[%s297_s3 + $0x8] sm:$0xff] }
   0x4   :  { %v211_v9 = vld [vmem:[%s297_s3] sm:$0xff] }
   0x5   :  { %175 = vmatmul.msk.bf16.vlgmr.msra.gmra.mxu0 %vm42_vm0, %v209_v2  ;;  %v219_v11 = vld [vmem:[%s298_s2] ss:$0 sm:$0xff] }
   0x6   :  { %128 = vmatpush.bf16.msra.mxu1 %v217_v3 }
   0x9   :  { %v220_v22 = vld [vmem:[#allocation2] ss:$0 sm:$0xff] }
   0xa   :  { %129 = vmatpush.bf16.msra.mxu1 %v216_v4 }
   0xe   :  { %130 = vmatpush.bf16.msra.mxu1 %v215_v5 }
  0x12   :  { %131 = vmatpush.bf16.msra.mxu1 %v214_v6 }
  0x16   :  { %132 = vmatpush.bf16.msra.mxu1 %v213_v7 }
  0x1a   :  { %133 = vmatpush.bf16.msra.mxu1 %v212_v8 }
  0x1e   :  { %134 = vmatpush.bf16.msra.mxu1 %v211_v9 }
  0x82   :  { %v55_v10 = vpop.f32.mrf.mxu0 }
  0x83   :  { %v56_v12 = vadd.f32 %v219_v11, %v55_v10 }
  0x85   :  { %v60_v15 = vmax.f32 %v56_v12, 0.0 }
  0x8a   :  { %v57_v13 = vpop.f32.mrf.mxu0 }
  0x8b   :  { %v58_v14 = vadd.f32 %v219_v11, %v57_v13 }
  0x8d   :  { %v61_v16 = vmax.f32 %v58_v14, 0.0 }
  0x8f   :  { %v62_v17 = vpack.c.bf16 %v61_v16, %v60_v15 }
  0x91   :  { %135 = vmatmul.bf16.vlgmr.msra.gmra.mxu1 %v62_v17 }
 0x10e   :  { %v136_v19 = vpop.f32.mrf.mxu1 }
 0x116   :  { %v138_v20 = vpop.f32.mrf.mxu1 }
 0x117   :  { %v141_v21 = vpack.c.bf16 %v138_v20, %v136_v19 }
 0x119   :  { %153 = vmatpush.bf16.msra.mxu2 %v141_v21 }
 0x11c   :  { %208 = vmatmul.msk.bf16.vlgmr.msra.gmra.mxu2 %vm42_vm0, %v209_v2 }
 0x19f   :  { %v155_v23 = vpop.f32.mrf.mxu2 }
 0x1a0   :  { %v156_v24 = vadd.f32 %v220_v22, %v155_v23 }
 0x1a2   :  { %161 = vst.msk [vmem:[%s300_s5] sm:$0xff] %vm160_vm1, %v156_v24 }
 0x1a7   :  { %v157_v25 = vpop.f32.mrf.mxu2 }
 0x1a8   :  { %v158_v26 = vadd.f32 %v220_v22, %v157_v25 }
 0x1aa   :  { %162 = vst.msk [vmem:[%s300_s5 + $0x8] sm:$0xff] %vm160_vm1, %v158_v26 }

</bundles_post_ra>
